<compile_context>
chip_gen: v5e
topology: v5e:2x2
jax: 0.10.0
libtpu: 0.0.40
codegen_flags: <defaults>
</compile_context>

<pallas_src>
import functools

import jax
import jax.numpy as jnp
from jax.experimental import pallas as pl
from jax.experimental.pallas import tpu as pltpu


def _layer_norm(x, w, b, eps=1e-5):
    mean = jnp.mean(x, axis=-1, keepdims=True)
    var = jnp.mean((x - mean) ** 2, axis=-1, keepdims=True)
    return (x - mean) * jax.lax.rsqrt(var + eps) * w + b


def decoder_block_kernel(num_heads, batch_block,
                         q_ref, k_ref, v_ref,
                         wq_ref, wk_ref, wv_ref,
                         bq_ref, bk_ref, bv_ref,
                         wo_ref, bo_ref,
                         ln1w_ref, ln1b_ref,
                         w1_ref, b1_ref,
                         w2_ref, b2_ref,
                         ln2w_ref, ln2b_ref,
                         out_ref):
    f32, bf16 = jnp.float32, jnp.bfloat16
    R, E = q_ref.shape                  # R = Nb * L rows in this batch block
    T = k_ref.shape[0]                  # T = Nb * S rows
    Nb = batch_block
    L, S = R // Nb, T // Nb
    H = num_heads
    Dh = E // H

    q = q_ref[...]
    if q.dtype != f32:                  # static dtype check; no-op for f32 inputs
        q = q.astype(f32)               # f32 copy kept for the residual

    def matmul(x, w_ref, b_ref):
        # rows @ pre-transposed bf16 weight, f32 accumulation, bias added once.
        return jnp.dot(x.astype(bf16), w_ref[...],
                       preferred_element_type=f32) + b_ref[...]

    # ---- in-projections over all Nb*L / Nb*S rows (big-row MXU matmuls) ----
    # (softmax scale is pre-folded into wq and bq by prepare_decoder_params)
    qp = matmul(q, wq_ref, bq_ref)
    kp = matmul(k_ref[...], wk_ref, bk_ref)
    vp = matmul(v_ref[...], wv_ref, bv_ref)

    # ---- batched multi-head attention ----
    # Group axis g = h * Nb + b merges (head, batch) so both attention
    # contractions are single batched einsums (leading-batch dot_general).
    # TODO(synk): the head split still uses H lane slices + a concat per
    # tensor; a slice-free reshape/pltpu.einshape path needs shape-specific
    # relayout lowering support and is left for a follow-up.
    def split_heads(x, rows):
        x3 = x.reshape(Nb, rows, E)
        return jnp.concatenate(
            [x3[:, :, h * Dh:(h + 1) * Dh] for h in range(H)], axis=0)

    qh = split_heads(qp, L).astype(bf16)            # (H*Nb, L, Dh)
    kh = split_heads(kp, S).astype(bf16)            # (H*Nb, S, Dh)
    vh = split_heads(vp, S).astype(bf16)            # (H*Nb, S, Dh)

    # TODO(synk): for large S, stream K/V chunks with an online-softmax
    # accumulator instead of materializing the full (H*Nb, L, S) f32 scores.
    s = jnp.einsum("gld,gsd->gls", qh, kh, preferred_element_type=f32)
    s = s - jnp.max(s, axis=-1, keepdims=True)
    p = jnp.exp(s)
    p = p * pl.reciprocal(jnp.sum(p, axis=-1, keepdims=True), approx=True)
    o = jnp.einsum("gls,gsd->gld", p.astype(bf16), vh,
                   preferred_element_type=f32)      # (H*Nb, L, Dh), f32

    # ---- output projection: one lane-concat back to (R, E), then a single
    #      K=E matmul (full MXU contraction depth, no per-head serial adds) ----
    o_flat = jnp.concatenate(
        [o[h * Nb:(h + 1) * Nb].reshape(R, Dh) for h in range(H)], axis=-1)
    attn = jnp.dot(o_flat.astype(bf16), wo_ref[...],
                   preferred_element_type=f32) + bo_ref[...]

    # ---- residual + LayerNorm1 (f32 VPU math) ----
    x = _layer_norm(q + attn, ln1w_ref[...], ln1b_ref[...])

    # ---- feed-forward: Linear -> ReLU -> Linear (bf16 MXU, f32 accumulate) ----
    # TODO(synk): at production ff_dim, tile the FFN over ff on an extra
    # "arbitrary" grid axis so w1/w2 stream instead of staying fully resident.
    h1 = jnp.maximum(matmul(x, w1_ref, b1_ref), 0.0)
    ff = matmul(h1, w2_ref, b2_ref)

    # ---- residual + LayerNorm2 ----
    y = _layer_norm(x + ff, ln2w_ref[...], ln2b_ref[...])
    out_ref[...] = y.astype(out_ref.dtype)


def _weights_vmem_bytes(E, ff):
    """Resident weight bytes (bf16 MXU weights single-buffered via Buffered(1),
    small f32 params counted generously at 2x)."""
    mxu_w = 2 * (4 * E * E + 2 * E * ff)
    small = 4 * (4 * E + ff + E + 4 * E) * 2
    return mxu_w + small


def _activations_vmem_bytes(nb, L, S, E, ff, H, in_dtype_bytes=4):
    """Rough per-grid-step activation VMEM estimate for one Nb-batch block."""
    R, T = nb * L, nb * S
    f32, bf16 = 4, 2
    act_dma = 2 * in_dtype_bytes * (2 * R * E + 2 * T * E)      # q,k,v,out x2 buf
    proj = (R + 2 * T) * E * (f32 + bf16)                       # qp/kp/vp + bf16 heads
    scores = 2 * H * nb * L * S * f32                           # s and p
    ctx = R * E * (f32 + bf16) + R * E * f32                    # o, o_flat, attn
    ffn = 3 * R * E * f32 + R * ff * (f32 + bf16)               # x, ff, y, h1
    return act_dma + proj + scores + ctx + ffn


def _pick_batch_block(N, L, S, E, ff, H, target_rows=512,
                      act_budget_bytes=40 << 20):
    """Largest divisor Nb of N such that:
       * the row block is 8-sublane aligned (or covers the full array),
       * block activations fit a conservative VMEM budget,
       * Nb*L approaches `target_rows` MXU rows (amortizes ~0.35us/step),
       * the grid keeps >= 2 steps when N >= 2 (v7x megacore engagement)."""
    def aligned(nb):
        return nb == N or ((nb * L) % 8 == 0 and (nb * S) % 8 == 0)

    def fits(nb):
        return _activations_vmem_bytes(nb, L, S, E, ff, H) <= act_budget_bytes

    cap = N if N < 2 else N // 2                 # keep grid >= 2 when possible
    want = max(1, min(cap, pl.cdiv(target_rows, max(L, 1))))
    for nb in range(want, 0, -1):
        if N % nb == 0 and aligned(nb) and fits(nb):
            return nb
    for nb in range(N, 0, -1):                   # fallback: any valid divisor
        if N % nb == 0 and aligned(nb):
            return nb
    return N


def prepare_decoder_params(params, num_heads):
    """One-time (hoisted) weight prep: transpose PyTorch (out,in) Linear
    weights, cast MXU operands to bf16, fold the softmax scale into wq/bq.
    Call once at init; the result is reused across decoder_block calls."""
    E = params["wq"].shape[0]
    Dh = E // num_heads
    scale = 1.0 / (Dh ** 0.5)
    bf16 = jnp.bfloat16
    return (
        (params["wq"].T * scale).astype(bf16),   # scale folded into q-projection
        params["wk"].T.astype(bf16),
        params["wv"].T.astype(bf16),
        params["bq"] * scale, params["bk"], params["bv"],
        params["wo"].T.astype(bf16), params["bo"],
        params["ln1_w"], params["ln1_b"],
        params["w1"].T.astype(bf16), params["b1"],
        params["w2"].T.astype(bf16), params["b2"],
        params["ln2_w"], params["ln2_b"],
    )


def decoder_block(query, key, value, prepared, num_heads):
    """query: (L, N, E), key/value: (S, N, E), prepared = prepare_decoder_params(...)
    -> (L, N, E)"""
    L, N, E = query.shape
    S = key.shape[0]
    assert E % num_heads == 0
    ff_dim = prepared[10].shape[1]               # w1^T is (E, ff)

    # batch-major, row-flattened activations
    qb = jnp.transpose(query, (1, 0, 2)).reshape(N * L, E)
    kb = jnp.transpose(key, (1, 0, 2)).reshape(N * S, E)
    vb = jnp.transpose(value, (1, 0, 2)).reshape(N * S, E)

    weight_args = prepared

    Nb = _pick_batch_block(N, L, S, E, ff_dim, num_heads)
    grid = (N // Nb,)

    # Explicit scoped-VMEM limit: resident weights + one activation block
    # (+50% margin), floored at 32 MiB and capped at v7x's 64 MiB physical.
    est = (_weights_vmem_bytes(E, ff_dim)
           + _activations_vmem_bytes(Nb, L, S, E, ff_dim, num_heads,
                                     in_dtype_bytes=query.dtype.itemsize))
    vmem_limit = int(min(max(1.5 * est + (4 << 20), 32 << 20), 64 << 20))

    def weight_spec(a):
        # Constant-index resident weight: single-buffered (block index never
        # changes, so double-buffering would only waste VMEM).
        nd = a.ndim
        return pl.BlockSpec(a.shape, lambda n, _nd=nd: (0,) * _nd,
                            pipeline_mode=pl.Buffered(buffer_count=1))

    in_specs = [
        pl.BlockSpec((Nb * L, E), lambda n: (n, 0)),
        pl.BlockSpec((Nb * S, E), lambda n: (n, 0)),
        pl.BlockSpec((Nb * S, E), lambda n: (n, 0)),
    ] + [weight_spec(w) for w in weight_args]

    out = pl.pallas_call(
        functools.partial(decoder_block_kernel, num_heads, Nb),
        out_shape=jax.ShapeDtypeStruct((N * L, E), query.dtype),
        grid=grid,
        in_specs=in_specs,
        out_specs=pl.BlockSpec((Nb * L, E), lambda n: (n, 0)),
        compiler_params=pltpu.CompilerParams(
            dimension_semantics=("parallel",),
            vmem_limit_bytes=vmem_limit),
    )(qb, kb, vb, *weight_args)

    return jnp.transpose(out.reshape(N, L, E), (1, 0, 2))   # back to (L, N, E)


def make_params(key, hidden_dim, num_heads, ff_dim):
    ks = jax.random.split(key, 8)
    s = 0.02
    wq = jax.random.normal(ks[0], (hidden_dim, hidden_dim), jnp.float32) * s
    wk = jax.random.normal(ks[1], (hidden_dim, hidden_dim), jnp.float32) * s
    wv = jax.random.normal(ks[2], (hidden_dim, hidden_dim), jnp.float32) * s
    wo = jax.random.normal(ks[3], (hidden_dim, hidden_dim), jnp.float32) * s
    bq = jax.random.normal(ks[4], (1, hidden_dim), jnp.float32) * s
    bk = jax.random.normal(ks[5], (1, hidden_dim), jnp.float32) * s
    bv = jax.random.normal(ks[6], (1, hidden_dim), jnp.float32) * s
    bo = jnp.zeros((1, hidden_dim), jnp.float32)
    k7, k8 = jax.random.split(ks[7])
    w1 = jax.random.normal(k7, (ff_dim, hidden_dim), jnp.float32) * s
    b1 = jnp.zeros((1, ff_dim), jnp.float32)
    w2 = jax.random.normal(k8, (hidden_dim, ff_dim), jnp.float32) * s
    b2 = jnp.zeros((1, hidden_dim), jnp.float32)
    ln1_w = jnp.ones((1, hidden_dim), jnp.float32)
    ln1_b = jnp.zeros((1, hidden_dim), jnp.float32)
    ln2_w = jnp.ones((1, hidden_dim), jnp.float32)
    ln2_b = jnp.zeros((1, hidden_dim), jnp.float32)
    return dict(wq=wq, wk=wk, wv=wv, bq=bq, bk=bk, bv=bv, wo=wo, bo=bo,
                ln1_w=ln1_w, ln1_b=ln1_b, w1=w1, b1=b1, w2=w2, b2=b2,
                ln2_w=ln2_w, ln2_b=ln2_b)


def decoder_block_ref(query, key, value, p, num_heads):
    """Pure-JAX f32 reference of the PyTorch forward (eval mode)."""
    L, N, E = query.shape
    S = key.shape[0]
    Dh = E // num_heads
    scale = 1.0 / (Dh ** 0.5)

    def one_batch(q, k, v):
        qp = q @ p["wq"].T + p["bq"][0]
        kp = k @ p["wk"].T + p["bk"][0]
        vp = v @ p["wv"].T + p["bv"][0]
        qh = qp.reshape(L, num_heads, Dh).transpose(1, 0, 2)
        kh = kp.reshape(S, num_heads, Dh).transpose(1, 0, 2)
        vh = vp.reshape(S, num_heads, Dh).transpose(1, 0, 2)
        s = jnp.einsum("hld,hsd->hls", qh, kh) * scale
        a = jax.nn.softmax(s, axis=-1)
        o = jnp.einsum("hls,hsd->hld", a, vh).transpose(1, 0, 2).reshape(L, E)
        attn_out = o @ p["wo"].T + p["bo"][0]
        x = q + attn_out
        x = _layer_norm(x, p["ln1_w"][0], p["ln1_b"][0])
        ff = jnp.maximum(x @ p["w1"].T + p["b1"][0], 0.0) @ p["w2"].T + p["b2"][0]
        y = x + ff
        return _layer_norm(y, p["ln2_w"][0], p["ln2_b"][0])

    qb = jnp.transpose(query, (1, 0, 2))
    kb = jnp.transpose(key, (1, 0, 2))
    vb = jnp.transpose(value, (1, 0, 2))
    out = jax.vmap(one_batch)(qb, kb, vb)
    return jnp.transpose(out, (1, 0, 2))


if __name__ == "__main__":
    # Small shapes consistent with the module's forward.
    L, S, N = 8, 8, 2          # target seq len, source seq len, batch
    hidden_dim, num_heads, ff_dim = 32, 4, 64

    root = jax.random.PRNGKey(0)
    kq, kk, kv, kp = jax.random.split(root, 4)
    query = jax.random.normal(kq, (L, N, hidden_dim), jnp.float32)
    key = jax.random.normal(kk, (S, N, hidden_dim), jnp.float32)
    value = jax.random.normal(kv, (S, N, hidden_dim), jnp.float32)
    params = make_params(kp, hidden_dim, num_heads, ff_dim)

    # Weight transpose / bf16 cast / scale fold hoisted out of the per-call path.
    prepared = prepare_decoder_params(params, num_heads)

    out = decoder_block(query, key, value, prepared, num_heads)
    out = jax.block_until_ready(out)

    ref = decoder_block_ref(query, key, value, params, num_heads)
    assert out.shape == (L, N, hidden_dim)
    # bf16 MXU operands with f32 accumulation -> compare at bf16-level tolerance.
    assert jnp.allclose(out, ref, atol=1e-2, rtol=1e-2), "mismatch vs JAX reference"

    print("KERNEL_OK")
</pallas_src>

<mosaic_0001>
module attributes {stable_mosaic.version = 11 : i64} {
  func.func @decoder_block_kernel(%arg0: i32, %arg1: memref<8x32xf32, #tpu.memory_space<vmem>>, %arg2: memref<8x32xf32, #tpu.memory_space<vmem>>, %arg3: memref<8x32xf32, #tpu.memory_space<vmem>>, %arg4: memref<32x32xbf16, #tpu.memory_space<vmem>>, %arg5: memref<32x32xbf16, #tpu.memory_space<vmem>>, %arg6: memref<32x32xbf16, #tpu.memory_space<vmem>>, %arg7: memref<1x32xf32, #tpu.memory_space<vmem>>, %arg8: memref<1x32xf32, #tpu.memory_space<vmem>>, %arg9: memref<1x32xf32, #tpu.memory_space<vmem>>, %arg10: memref<32x32xbf16, #tpu.memory_space<vmem>>, %arg11: memref<1x32xf32, #tpu.memory_space<vmem>>, %arg12: memref<1x32xf32, #tpu.memory_space<vmem>>, %arg13: memref<1x32xf32, #tpu.memory_space<vmem>>, %arg14: memref<32x64xbf16, #tpu.memory_space<vmem>>, %arg15: memref<1x64xf32, #tpu.memory_space<vmem>>, %arg16: memref<64x32xbf16, #tpu.memory_space<vmem>>, %arg17: memref<1x32xf32, #tpu.memory_space<vmem>>, %arg18: memref<1x32xf32, #tpu.memory_space<vmem>>, %arg19: memref<1x32xf32, #tpu.memory_space<vmem>>, %arg20: memref<8x32xf32, #tpu.memory_space<vmem>>) attributes {dimension_semantics = [#tpu.dimension_semantics<parallel>], iteration_bounds = array<i64: 2>, scalar_prefetch = 0 : i64, scratch_operands = 0 : i64, tpu.core_type = #tpu.core_type<tc>, window_params = [{transform_indices = @transform_0, window_bounds = array<i64: 8, 32>}, {transform_indices = @transform_1, window_bounds = array<i64: 8, 32>}, {transform_indices = @transform_2, window_bounds = array<i64: 8, 32>}, {pipeline_mode = #tpu.pipeline_mode<synchronous>, transform_indices = @transform_3, window_bounds = array<i64: 32, 32>}, {pipeline_mode = #tpu.pipeline_mode<synchronous>, transform_indices = @transform_4, window_bounds = array<i64: 32, 32>}, {pipeline_mode = #tpu.pipeline_mode<synchronous>, transform_indices = @transform_5, window_bounds = array<i64: 32, 32>}, {pipeline_mode = #tpu.pipeline_mode<synchronous>, transform_indices = @transform_6, window_bounds = array<i64: 1, 32>}, {pipeline_mode = #tpu.pipeline_mode<synchronous>, transform_indices = @transform_7, window_bounds = array<i64: 1, 32>}, {pipeline_mode = #tpu.pipeline_mode<synchronous>, transform_indices = @transform_8, window_bounds = array<i64: 1, 32>}, {pipeline_mode = #tpu.pipeline_mode<synchronous>, transform_indices = @transform_9, window_bounds = array<i64: 32, 32>}, {pipeline_mode = #tpu.pipeline_mode<synchronous>, transform_indices = @transform_10, window_bounds = array<i64: 1, 32>}, {pipeline_mode = #tpu.pipeline_mode<synchronous>, transform_indices = @transform_11, window_bounds = array<i64: 1, 32>}, {pipeline_mode = #tpu.pipeline_mode<synchronous>, transform_indices = @transform_12, window_bounds = array<i64: 1, 32>}, {pipeline_mode = #tpu.pipeline_mode<synchronous>, transform_indices = @transform_13, window_bounds = array<i64: 32, 64>}, {pipeline_mode = #tpu.pipeline_mode<synchronous>, transform_indices = @transform_14, window_bounds = array<i64: 1, 64>}, {pipeline_mode = #tpu.pipeline_mode<synchronous>, transform_indices = @transform_15, window_bounds = array<i64: 64, 32>}, {pipeline_mode = #tpu.pipeline_mode<synchronous>, transform_indices = @transform_16, window_bounds = array<i64: 1, 32>}, {pipeline_mode = #tpu.pipeline_mode<synchronous>, transform_indices = @transform_17, window_bounds = array<i64: 1, 32>}, {pipeline_mode = #tpu.pipeline_mode<synchronous>, transform_indices = @transform_18, window_bounds = array<i64: 1, 32>}, {transform_indices = @transform_19, window_bounds = array<i64: 8, 32>}]} {
    %c0 = arith.constant 0 : index
    %c0_0 = arith.constant 0 : index
    %0 = vector.load %arg1[%c0, %c0_0] : memref<8x32xf32, #tpu.memory_space<vmem>>, vector<8x32xf32>
    %1 = arith.truncf %0 : vector<8x32xf32> to vector<8x32xbf16>
    %c0_1 = arith.constant 0 : index
    %c0_2 = arith.constant 0 : index
    %2 = vector.load %arg4[%c0_1, %c0_2] : memref<32x32xbf16, #tpu.memory_space<vmem>>, vector<32x32xbf16>
    %cst = arith.constant dense<0.000000e+00> : vector<8x32xf32>
    %3 = tpu.matmul %1, %2, %cst {dimension_numbers = #tpu.dot_dimension_numbers<[1], [0], [0], [1], [0, 0, 1, 1], [], []>} : vector<8x32xbf16>, vector<32x32xbf16>, vector<8x32xf32> -> vector<8x32xf32>
    %c0_3 = arith.constant 0 : index
    %c0_4 = arith.constant 0 : index
    %4 = vector.load %arg7[%c0_3, %c0_4] : memref<1x32xf32, #tpu.memory_space<vmem>>, vector<1x32xf32>
    %5 = vector.broadcast %4 : vector<1x32xf32> to vector<8x32xf32>
    %6 = arith.addf %3, %5 : vector<8x32xf32>
    %c0_5 = arith.constant 0 : index
    %c0_6 = arith.constant 0 : index
    %7 = vector.load %arg2[%c0_5, %c0_6] : memref<8x32xf32, #tpu.memory_space<vmem>>, vector<8x32xf32>
    %8 = arith.truncf %7 : vector<8x32xf32> to vector<8x32xbf16>
    %c0_7 = arith.constant 0 : index
    %c0_8 = arith.constant 0 : index
    %9 = vector.load %arg5[%c0_7, %c0_8] : memref<32x32xbf16, #tpu.memory_space<vmem>>, vector<32x32xbf16>
    %cst_9 = arith.constant dense<0.000000e+00> : vector<8x32xf32>
    %10 = tpu.matmul %8, %9, %cst_9 {dimension_numbers = #tpu.dot_dimension_numbers<[1], [0], [0], [1], [0, 0, 1, 1], [], []>} : vector<8x32xbf16>, vector<32x32xbf16>, vector<8x32xf32> -> vector<8x32xf32>
    %c0_10 = arith.constant 0 : index
    %c0_11 = arith.constant 0 : index
    %11 = vector.load %arg8[%c0_10, %c0_11] : memref<1x32xf32, #tpu.memory_space<vmem>>, vector<1x32xf32>
    %12 = vector.broadcast %11 : vector<1x32xf32> to vector<8x32xf32>
    %13 = arith.addf %10, %12 : vector<8x32xf32>
    %c0_12 = arith.constant 0 : index
    %c0_13 = arith.constant 0 : index
    %14 = vector.load %arg3[%c0_12, %c0_13] : memref<8x32xf32, #tpu.memory_space<vmem>>, vector<8x32xf32>
    %15 = arith.truncf %14 : vector<8x32xf32> to vector<8x32xbf16>
    %c0_14 = arith.constant 0 : index
    %c0_15 = arith.constant 0 : index
    %16 = vector.load %arg6[%c0_14, %c0_15] : memref<32x32xbf16, #tpu.memory_space<vmem>>, vector<32x32xbf16>
    %cst_16 = arith.constant dense<0.000000e+00> : vector<8x32xf32>
    %17 = tpu.matmul %15, %16, %cst_16 {dimension_numbers = #tpu.dot_dimension_numbers<[1], [0], [0], [1], [0, 0, 1, 1], [], []>} : vector<8x32xbf16>, vector<32x32xbf16>, vector<8x32xf32> -> vector<8x32xf32>
    %c0_17 = arith.constant 0 : index
    %c0_18 = arith.constant 0 : index
    %18 = vector.load %arg9[%c0_17, %c0_18] : memref<1x32xf32, #tpu.memory_space<vmem>>, vector<1x32xf32>
    %19 = vector.broadcast %18 : vector<1x32xf32> to vector<8x32xf32>
    %20 = arith.addf %17, %19 : vector<8x32xf32>
    %21 = vector.shape_cast %6 : vector<8x32xf32> to vector<1x8x32xf32>
    %22 = vector.extract_strided_slice %21 {offsets = [0, 0, 0], sizes = [1, 8, 8], strides = [1, 1, 1]} : vector<1x8x32xf32> to vector<1x8x8xf32>
    %23 = vector.extract_strided_slice %21 {offsets = [0, 0, 8], sizes = [1, 8, 8], strides = [1, 1, 1]} : vector<1x8x32xf32> to vector<1x8x8xf32>
    %24 = vector.extract_strided_slice %21 {offsets = [0, 0, 16], sizes = [1, 8, 8], strides = [1, 1, 1]} : vector<1x8x32xf32> to vector<1x8x8xf32>
    %25 = vector.extract_strided_slice %21 {offsets = [0, 0, 24], sizes = [1, 8, 8], strides = [1, 1, 1]} : vector<1x8x32xf32> to vector<1x8x8xf32>
    %26 = tpu.concatenate %22, %23, %24, %25 in 0 : vector<1x8x8xf32>, vector<1x8x8xf32>, vector<1x8x8xf32>, vector<1x8x8xf32> -> vector<4x8x8xf32>
    %27 = arith.truncf %26 : vector<4x8x8xf32> to vector<4x8x8xbf16>
    %28 = vector.shape_cast %13 : vector<8x32xf32> to vector<1x8x32xf32>
    %29 = vector.extract_strided_slice %28 {offsets = [0, 0, 0], sizes = [1, 8, 8], strides = [1, 1, 1]} : vector<1x8x32xf32> to vector<1x8x8xf32>
    %30 = vector.extract_strided_slice %28 {offsets = [0, 0, 8], sizes = [1, 8, 8], strides = [1, 1, 1]} : vector<1x8x32xf32> to vector<1x8x8xf32>
    %31 = vector.extract_strided_slice %28 {offsets = [0, 0, 16], sizes = [1, 8, 8], strides = [1, 1, 1]} : vector<1x8x32xf32> to vector<1x8x8xf32>
    %32 = vector.extract_strided_slice %28 {offsets = [0, 0, 24], sizes = [1, 8, 8], strides = [1, 1, 1]} : vector<1x8x32xf32> to vector<1x8x8xf32>
    %33 = tpu.concatenate %29, %30, %31, %32 in 0 : vector<1x8x8xf32>, vector<1x8x8xf32>, vector<1x8x8xf32>, vector<1x8x8xf32> -> vector<4x8x8xf32>
    %34 = arith.truncf %33 : vector<4x8x8xf32> to vector<4x8x8xbf16>
    %35 = vector.shape_cast %20 : vector<8x32xf32> to vector<1x8x32xf32>
    %36 = vector.extract_strided_slice %35 {offsets = [0, 0, 0], sizes = [1, 8, 8], strides = [1, 1, 1]} : vector<1x8x32xf32> to vector<1x8x8xf32>
    %37 = vector.extract_strided_slice %35 {offsets = [0, 0, 8], sizes = [1, 8, 8], strides = [1, 1, 1]} : vector<1x8x32xf32> to vector<1x8x8xf32>
    %38 = vector.extract_strided_slice %35 {offsets = [0, 0, 16], sizes = [1, 8, 8], strides = [1, 1, 1]} : vector<1x8x32xf32> to vector<1x8x8xf32>
    %39 = vector.extract_strided_slice %35 {offsets = [0, 0, 24], sizes = [1, 8, 8], strides = [1, 1, 1]} : vector<1x8x32xf32> to vector<1x8x8xf32>
    %40 = tpu.concatenate %36, %37, %38, %39 in 0 : vector<1x8x8xf32>, vector<1x8x8xf32>, vector<1x8x8xf32>, vector<1x8x8xf32> -> vector<4x8x8xf32>
    %41 = arith.truncf %40 : vector<4x8x8xf32> to vector<4x8x8xbf16>
    "tpu.trace_start"() <{level = 10 : i32, message = "gld,gsd->gls"}> : () -> ()
    %cst_19 = arith.constant dense<0.000000e+00> : vector<4x8x8xf32>
    %42 = tpu.matmul %27, %34, %cst_19 {dimension_numbers = #tpu.dot_dimension_numbers<[2], [2], [1], [1], [0, 0, 0, 1, 1, 1], [0], [0]>} : vector<4x8x8xbf16>, vector<4x8x8xbf16>, vector<4x8x8xf32> -> vector<4x8x8xf32>
    "tpu.trace_stop"() : () -> ()
    %cst_20 = arith.constant dense<0xFF800000> : vector<4x8xf32>
    %43 = vector.multi_reduction <maximumf>, %42, %cst_20 [2] : vector<4x8x8xf32> to vector<4x8xf32>
    %44 = vector.shape_cast %43 : vector<4x8xf32> to vector<4x8x1xf32>
    %45 = vector.broadcast %44 : vector<4x8x1xf32> to vector<4x8x8xf32>
    %46 = arith.subf %42, %45 : vector<4x8x8xf32>
    %47 = math.exp %46 : vector<4x8x8xf32>
    %cst_21 = arith.constant dense<0.000000e+00> : vector<4x8xf32>
    %48 = vector.multi_reduction <add>, %47, %cst_21 [2] : vector<4x8x8xf32> to vector<4x8xf32>
    %49 = vector.shape_cast %48 : vector<4x8xf32> to vector<4x8x1xf32>
    %50 = tpu.reciprocal %49 {approx = true} : vector<4x8x1xf32> -> vector<4x8x1xf32>
    %51 = vector.broadcast %50 : vector<4x8x1xf32> to vector<4x8x8xf32>
    %52 = arith.mulf %47, %51 : vector<4x8x8xf32>
    %53 = arith.truncf %52 : vector<4x8x8xf32> to vector<4x8x8xbf16>
    "tpu.trace_start"() <{level = 10 : i32, message = "gls,gsd->gld"}> : () -> ()
    %cst_22 = arith.constant dense<0.000000e+00> : vector<4x8x8xf32>
    %54 = tpu.matmul %53, %41, %cst_22 {dimension_numbers = #tpu.dot_dimension_numbers<[2], [1], [1], [2], [0, 0, 0, 1, 1, 2], [0], [0]>} : vector<4x8x8xbf16>, vector<4x8x8xbf16>, vector<4x8x8xf32> -> vector<4x8x8xf32>
    "tpu.trace_stop"() : () -> ()
    %55 = vector.extract_strided_slice %54 {offsets = [0, 0, 0], sizes = [1, 8, 8], strides = [1, 1, 1]} : vector<4x8x8xf32> to vector<1x8x8xf32>
    %56 = vector.shape_cast %55 : vector<1x8x8xf32> to vector<8x8xf32>
    %57 = vector.extract_strided_slice %54 {offsets = [1, 0, 0], sizes = [1, 8, 8], strides = [1, 1, 1]} : vector<4x8x8xf32> to vector<1x8x8xf32>
    %58 = vector.shape_cast %57 : vector<1x8x8xf32> to vector<8x8xf32>
    %59 = vector.extract_strided_slice %54 {offsets = [2, 0, 0], sizes = [1, 8, 8], strides = [1, 1, 1]} : vector<4x8x8xf32> to vector<1x8x8xf32>
    %60 = vector.shape_cast %59 : vector<1x8x8xf32> to vector<8x8xf32>
    %61 = vector.extract_strided_slice %54 {offsets = [3, 0, 0], sizes = [1, 8, 8], strides = [1, 1, 1]} : vector<4x8x8xf32> to vector<1x8x8xf32>
    %62 = vector.shape_cast %61 : vector<1x8x8xf32> to vector<8x8xf32>
    %63 = tpu.concatenate %56, %58, %60, %62 in 1 : vector<8x8xf32>, vector<8x8xf32>, vector<8x8xf32>, vector<8x8xf32> -> vector<8x32xf32>
    %64 = arith.truncf %63 : vector<8x32xf32> to vector<8x32xbf16>
    %c0_23 = arith.constant 0 : index
    %c0_24 = arith.constant 0 : index
    %65 = vector.load %arg10[%c0_23, %c0_24] : memref<32x32xbf16, #tpu.memory_space<vmem>>, vector<32x32xbf16>
    %cst_25 = arith.constant dense<0.000000e+00> : vector<8x32xf32>
    %66 = tpu.matmul %64, %65, %cst_25 {dimension_numbers = #tpu.dot_dimension_numbers<[1], [0], [0], [1], [0, 0, 1, 1], [], []>} : vector<8x32xbf16>, vector<32x32xbf16>, vector<8x32xf32> -> vector<8x32xf32>
    %c0_26 = arith.constant 0 : index
    %c0_27 = arith.constant 0 : index
    %67 = vector.load %arg11[%c0_26, %c0_27] : memref<1x32xf32, #tpu.memory_space<vmem>>, vector<1x32xf32>
    %68 = vector.broadcast %67 : vector<1x32xf32> to vector<8x32xf32>
    %69 = arith.addf %66, %68 : vector<8x32xf32>
    %70 = arith.addf %0, %69 : vector<8x32xf32>
    %c0_28 = arith.constant 0 : index
    %c0_29 = arith.constant 0 : index
    %71 = vector.load %arg12[%c0_28, %c0_29] : memref<1x32xf32, #tpu.memory_space<vmem>>, vector<1x32xf32>
    %c0_30 = arith.constant 0 : index
    %c0_31 = arith.constant 0 : index
    %72 = vector.load %arg13[%c0_30, %c0_31] : memref<1x32xf32, #tpu.memory_space<vmem>>, vector<1x32xf32>
    %cst_32 = arith.constant dense<0.000000e+00> : vector<8xf32>
    %73 = vector.multi_reduction <add>, %70, %cst_32 [1] : vector<8x32xf32> to vector<8xf32>
    %74 = vector.shape_cast %73 : vector<8xf32> to vector<8x1xf32>
    %cst_33 = arith.constant 3.200000e+01 : f32
    %75 = vector.broadcast %cst_33 : f32 to vector<8x1xf32>
    %76 = arith.divf %74, %75 : vector<8x1xf32>
    %77 = vector.broadcast %76 : vector<8x1xf32> to vector<8x32xf32>
    %78 = arith.subf %70, %77 : vector<8x32xf32>
    %79 = arith.mulf %78, %78 : vector<8x32xf32>
    %cst_34 = arith.constant dense<0.000000e+00> : vector<8xf32>
    %80 = vector.multi_reduction <add>, %79, %cst_34 [1] : vector<8x32xf32> to vector<8xf32>
    %81 = vector.shape_cast %80 : vector<8xf32> to vector<8x1xf32>
    %cst_35 = arith.constant 3.200000e+01 : f32
    %82 = vector.broadcast %cst_35 : f32 to vector<8x1xf32>
    %83 = arith.divf %81, %82 : vector<8x1xf32>
    %84 = vector.broadcast %76 : vector<8x1xf32> to vector<8x32xf32>
    %85 = arith.subf %70, %84 : vector<8x32xf32>
    %cst_36 = arith.constant 9.99999974E-6 : f32
    %86 = vector.broadcast %cst_36 : f32 to vector<8x1xf32>
    %87 = arith.addf %83, %86 : vector<8x1xf32>
    %88 = math.rsqrt %87 : vector<8x1xf32>
    %89 = vector.broadcast %88 : vector<8x1xf32> to vector<8x32xf32>
    %90 = arith.mulf %85, %89 : vector<8x32xf32>
    %91 = vector.broadcast %71 : vector<1x32xf32> to vector<8x32xf32>
    %92 = arith.mulf %90, %91 : vector<8x32xf32>
    %93 = vector.broadcast %72 : vector<1x32xf32> to vector<8x32xf32>
    %94 = arith.addf %92, %93 : vector<8x32xf32>
    %95 = arith.truncf %94 : vector<8x32xf32> to vector<8x32xbf16>
    %c0_37 = arith.constant 0 : index
    %c0_38 = arith.constant 0 : index
    %96 = vector.load %arg14[%c0_37, %c0_38] : memref<32x64xbf16, #tpu.memory_space<vmem>>, vector<32x64xbf16>
    %cst_39 = arith.constant dense<0.000000e+00> : vector<8x64xf32>
    %97 = tpu.matmul %95, %96, %cst_39 {dimension_numbers = #tpu.dot_dimension_numbers<[1], [0], [0], [1], [0, 0, 1, 1], [], []>} : vector<8x32xbf16>, vector<32x64xbf16>, vector<8x64xf32> -> vector<8x64xf32>
    %c0_40 = arith.constant 0 : index
    %c0_41 = arith.constant 0 : index
    %98 = vector.load %arg15[%c0_40, %c0_41] : memref<1x64xf32, #tpu.memory_space<vmem>>, vector<1x64xf32>
    %99 = vector.broadcast %98 : vector<1x64xf32> to vector<8x64xf32>
    %100 = arith.addf %97, %99 : vector<8x64xf32>
    %cst_42 = arith.constant 0.000000e+00 : f32
    %101 = vector.broadcast %cst_42 : f32 to vector<8x64xf32>
    %102 = arith.maximumf %100, %101 : vector<8x64xf32>
    %103 = arith.truncf %102 : vector<8x64xf32> to vector<8x64xbf16>
    %c0_43 = arith.constant 0 : index
    %c0_44 = arith.constant 0 : index
    %104 = vector.load %arg16[%c0_43, %c0_44] : memref<64x32xbf16, #tpu.memory_space<vmem>>, vector<64x32xbf16>
    %cst_45 = arith.constant dense<0.000000e+00> : vector<8x32xf32>
    %105 = tpu.matmul %103, %104, %cst_45 {dimension_numbers = #tpu.dot_dimension_numbers<[1], [0], [0], [1], [0, 0, 1, 1], [], []>} : vector<8x64xbf16>, vector<64x32xbf16>, vector<8x32xf32> -> vector<8x32xf32>
    %c0_46 = arith.constant 0 : index
    %c0_47 = arith.constant 0 : index
    %106 = vector.load %arg17[%c0_46, %c0_47] : memref<1x32xf32, #tpu.memory_space<vmem>>, vector<1x32xf32>
    %107 = vector.broadcast %106 : vector<1x32xf32> to vector<8x32xf32>
    %108 = arith.addf %105, %107 : vector<8x32xf32>
    %109 = arith.addf %94, %108 : vector<8x32xf32>
    %c0_48 = arith.constant 0 : index
    %c0_49 = arith.constant 0 : index
    %110 = vector.load %arg18[%c0_48, %c0_49] : memref<1x32xf32, #tpu.memory_space<vmem>>, vector<1x32xf32>
    %c0_50 = arith.constant 0 : index
    %c0_51 = arith.constant 0 : index
    %111 = vector.load %arg19[%c0_50, %c0_51] : memref<1x32xf32, #tpu.memory_space<vmem>>, vector<1x32xf32>
    %cst_52 = arith.constant dense<0.000000e+00> : vector<8xf32>
    %112 = vector.multi_reduction <add>, %109, %cst_52 [1] : vector<8x32xf32> to vector<8xf32>
    %113 = vector.shape_cast %112 : vector<8xf32> to vector<8x1xf32>
    %cst_53 = arith.constant 3.200000e+01 : f32
    %114 = vector.broadcast %cst_53 : f32 to vector<8x1xf32>
    %115 = arith.divf %113, %114 : vector<8x1xf32>
    %116 = vector.broadcast %115 : vector<8x1xf32> to vector<8x32xf32>
    %117 = arith.subf %109, %116 : vector<8x32xf32>
    %118 = arith.mulf %117, %117 : vector<8x32xf32>
    %cst_54 = arith.constant dense<0.000000e+00> : vector<8xf32>
    %119 = vector.multi_reduction <add>, %118, %cst_54 [1] : vector<8x32xf32> to vector<8xf32>
    %120 = vector.shape_cast %119 : vector<8xf32> to vector<8x1xf32>
    %cst_55 = arith.constant 3.200000e+01 : f32
    %121 = vector.broadcast %cst_55 : f32 to vector<8x1xf32>
    %122 = arith.divf %120, %121 : vector<8x1xf32>
    %123 = vector.broadcast %115 : vector<8x1xf32> to vector<8x32xf32>
    %124 = arith.subf %109, %123 : vector<8x32xf32>
    %cst_56 = arith.constant 9.99999974E-6 : f32
    %125 = vector.broadcast %cst_56 : f32 to vector<8x1xf32>
    %126 = arith.addf %122, %125 : vector<8x1xf32>
    %127 = math.rsqrt %126 : vector<8x1xf32>
    %128 = vector.broadcast %127 : vector<8x1xf32> to vector<8x32xf32>
    %129 = arith.mulf %124, %128 : vector<8x32xf32>
    %130 = vector.broadcast %110 : vector<1x32xf32> to vector<8x32xf32>
    %131 = arith.mulf %129, %130 : vector<8x32xf32>
    %132 = vector.broadcast %111 : vector<1x32xf32> to vector<8x32xf32>
    %133 = arith.addf %131, %132 : vector<8x32xf32>
    %c0_57 = arith.constant 0 : index
    %c0_58 = arith.constant 0 : index
    %134 = vector.load %arg20[%c0_57, %c0_58] : memref<8x32xf32, #tpu.memory_space<vmem>>, vector<8x32xf32>
    tpu.vector_store %arg20[%c0_57, %c0_58], %133 {strides = array<i32>} : memref<8x32xf32, #tpu.memory_space<vmem>>, vector<8x32xf32>,
    return
  }
  func.func @transform_0(%arg0: i32) -> (i32, i32) {
    %c0_i32 = arith.constant 0 : i32
    %c0_i32_0 = arith.constant 0 : i32
    return %arg0, %c0_i32 : i32, i32
  }
  func.func @transform_1(%arg0: i32) -> (i32, i32) {
    %c0_i32 = arith.constant 0 : i32
    %c0_i32_0 = arith.constant 0 : i32
    return %arg0, %c0_i32 : i32, i32
  }
  func.func @transform_2(%arg0: i32) -> (i32, i32) {
    %c0_i32 = arith.constant 0 : i32
    %c0_i32_0 = arith.constant 0 : i32
    return %arg0, %c0_i32 : i32, i32
  }
  func.func @transform_3(%arg0: i32) -> (i32, i32) {
    %c0_i32 = arith.constant 0 : i32
    %c0_i32_0 = arith.constant 0 : i32
    %c0_i32_1 = arith.constant 0 : i32
    return %c0_i32, %c0_i32_0 : i32, i32
  }
  func.func @transform_4(%arg0: i32) -> (i32, i32) {
    %c0_i32 = arith.constant 0 : i32
    %c0_i32_0 = arith.constant 0 : i32
    %c0_i32_1 = arith.constant 0 : i32
    return %c0_i32, %c0_i32_0 : i32, i32
  }
  func.func @transform_5(%arg0: i32) -> (i32, i32) {
    %c0_i32 = arith.constant 0 : i32
    %c0_i32_0 = arith.constant 0 : i32
    %c0_i32_1 = arith.constant 0 : i32
    return %c0_i32, %c0_i32_0 : i32, i32
  }
  func.func @transform_6(%arg0: i32) -> (i32, i32) {
    %c0_i32 = arith.constant 0 : i32
    %c0_i32_0 = arith.constant 0 : i32
    %c0_i32_1 = arith.constant 0 : i32
    return %c0_i32, %c0_i32_0 : i32, i32
  }
  func.func @transform_7(%arg0: i32) -> (i32, i32) {
    %c0_i32 = arith.constant 0 : i32
    %c0_i32_0 = arith.constant 0 : i32
    %c0_i32_1 = arith.constant 0 : i32
    return %c0_i32, %c0_i32_0 : i32, i32
  }
  func.func @transform_8(%arg0: i32) -> (i32, i32) {
    %c0_i32 = arith.constant 0 : i32
    %c0_i32_0 = arith.constant 0 : i32
    %c0_i32_1 = arith.constant 0 : i32
    return %c0_i32, %c0_i32_0 : i32, i32
  }
  func.func @transform_9(%arg0: i32) -> (i32, i32) {
    %c0_i32 = arith.constant 0 : i32
    %c0_i32_0 = arith.constant 0 : i32
    %c0_i32_1 = arith.constant 0 : i32
    return %c0_i32, %c0_i32_0 : i32, i32
  }
  func.func @transform_10(%arg0: i32) -> (i32, i32) {
    %c0_i32 = arith.constant 0 : i32
    %c0_i32_0 = arith.constant 0 : i32
    %c0_i32_1 = arith.constant 0 : i32
    return %c0_i32, %c0_i32_0 : i32, i32
  }
  func.func @transform_11(%arg0: i32) -> (i32, i32) {
    %c0_i32 = arith.constant 0 : i32
    %c0_i32_0 = arith.constant 0 : i32
    %c0_i32_1 = arith.constant 0 : i32
    return %c0_i32, %c0_i32_0 : i32, i32
  }
  func.func @transform_12(%arg0: i32) -> (i32, i32) {
    %c0_i32 = arith.constant 0 : i32
    %c0_i32_0 = arith.constant 0 : i32
    %c0_i32_1 = arith.constant 0 : i32
    return %c0_i32, %c0_i32_0 : i32, i32
  }
  func.func @transform_13(%arg0: i32) -> (i32, i32) {
    %c0_i32 = arith.constant 0 : i32
    %c0_i32_0 = arith.constant 0 : i32
    %c0_i32_1 = arith.constant 0 : i32
    return %c0_i32, %c0_i32_0 : i32, i32
  }
  func.func @transform_14(%arg0: i32) -> (i32, i32) {
    %c0_i32 = arith.constant 0 : i32
    %c0_i32_0 = arith.constant 0 : i32
    %c0_i32_1 = arith.constant 0 : i32
    return %c0_i32, %c0_i32_0 : i32, i32
  }
  func.func @transform_15(%arg0: i32) -> (i32, i32) {
    %c0_i32 = arith.constant 0 : i32
    %c0_i32_0 = arith.constant 0 : i32
    %c0_i32_1 = arith.constant 0 : i32
    return %c0_i32, %c0_i32_0 : i32, i32
  }
  func.func @transform_16(%arg0: i32) -> (i32, i32) {
    %c0_i32 = arith.constant 0 : i32
    %c0_i32_0 = arith.constant 0 : i32
    %c0_i32_1 = arith.constant 0 : i32
    return %c0_i32, %c0_i32_0 : i32, i32
  }
  func.func @transform_17(%arg0: i32) -> (i32, i32) {
    %c0_i32 = arith.constant 0 : i32
    %c0_i32_0 = arith.constant 0 : i32
    %c0_i32_1 = arith.constant 0 : i32
    return %c0_i32, %c0_i32_0 : i32, i32
  }
  func.func @transform_18(%arg0: i32) -> (i32, i32) {
    %c0_i32 = arith.constant 0 : i32
    %c0_i32_0 = arith.constant 0 : i32
    %c0_i32_1 = arith.constant 0 : i32
    return %c0_i32, %c0_i32_0 : i32, i32
  }
  func.func @transform_19(%arg0: i32) -> (i32, i32) {
    %c0_i32 = arith.constant 0 : i32
    %c0_i32_0 = arith.constant 0 : i32
    return %arg0, %c0_i32 : i32, i32
  }
}

</mosaic_0001>

<bundles_post_ra>
// kernel: tpu_custom_call.1
= control target key start
LH: loop header
LB: loop body
LE: loop exit
PB: predicated region body
PF: predicated region fallthrough
CT: control target
= control target key end

     0   :  { %s2260_s0 = inlined_call_operand.vmem [shape: f32[16,32], index: 0, kind: input, shape index: {}]   ;;  %s2261_s1 = inlined_call_operand.vmem [shape: f32[16,32], index: 1, kind: input, shape index: {}]   ;;  %s2262_s2 = inlined_call_operand.vmem [shape: f32[16,32], index: 2, kind: input, shape index: {}]   ;;  %s2263_s3 = inlined_call_operand.hbm [shape: bf16[32,32], index: 3, kind: input, shape index: {}]   ;;  %s2264_s4 = inlined_call_operand.hbm [shape: bf16[32,32], index: 4, kind: input, shape index: {}]   ;;  %s2265_s5 = inlined_call_operand.hbm [shape: bf16[32,32], index: 5, kind: input, shape index: {}]   ;;  %s2266_s6 = inlined_call_operand.vmem [shape: f32[1,32], index: 6, kind: input, shape index: {}]   ;;  %s2267_s7 = inlined_call_operand.vmem [shape: f32[1,32], index: 7, kind: input, shape index: {}]   ;;  %s2268_s8 = inlined_call_operand.vmem [shape: f32[1,32], index: 8, kind: input, shape index: {}]   ;;  %s2269_s9 = inlined_call_operand.hbm [shape: bf16[32,32], index: 9, kind: input, shape index: {}]   ;;  %s2270_s10 = inlined_call_operand.vmem [shape: f32[1,32], index: 10, kind: input, shape index: {}]   ;;  %s2271_s11 = inlined_call_operand.vmem [shape: f32[1,32], index: 11, kind: input, shape index: {}]   ;;  %s2272_s12 = inlined_call_operand.vmem [shape: f32[1,32], index: 12, kind: input, shape index: {}]   ;;  %s2273_s13 = inlined_call_operand.hbm [shape: bf16[32,64], index: 13, kind: input, shape index: {}]   ;;  %s2274_s14 = inlined_call_operand.vmem [shape: f32[1,64], index: 14, kind: input, shape index: {}]   ;;  %s2275_s15 = inlined_call_operand.vmem [shape: bf16[64,32], index: 15, kind: input, shape index: {}]   ;;  %s2276_s16 = inlined_call_operand.vmem [shape: f32[1,32], index: 16, kind: input, shape index: {}]   ;;  %s2277_s17 = inlined_call_operand.vmem [shape: f32[1,32], index: 17, kind: input, shape index: {}]   ;;  %s2278_s18 = inlined_call_operand.vmem [shape: f32[1,32], index: 18, kind: input, shape index: {}]   ;;  %s2279_s19 = inlined_call_operand.hbm [shape: f32[16,32], index: 19, kind: output, shape index: {}]  }
   0x1   :  { %2289 = sst [smem:[#allocation23_spill]] %s2260_s0 }
   0x2   :  { %2290 = sst [smem:[#allocation24_spill]] %s2261_s1 }
   0x3   :  { %2291 = sst [smem:[#allocation25_spill]] %s2262_s2 }
   0x4   :  { %2292 = sst [smem:[#allocation26_spill]] %s2263_s3 }
   0x5   :  { %2293 = sst [smem:[#allocation27_spill]] %s2264_s4 }
   0x6   :  { %2294 = sst [smem:[#allocation28_spill]] %s2269_s9 }
   0x7   :  { %2295 = sst [smem:[#allocation29_spill]] %s2277_s17 }
   0x8   :  { %2296 = sst [smem:[#allocation30_spill]] %s2278_s18 }
   0x9   :  { %2297 = sst [smem:[#allocation31_spill]] %s2279_s19 }
   0xa   :  { %24 = vsyncpa [#allocation3], 0 }
   0xb   :  { %25 = vsyncpa [#allocation6], 0 }
   0xc   :  { %26 = vsyncpa [#allocation9], 0 }
   0xd   :  { %27 = vsyncpa [#allocation4], 0 }
   0xe   :  { %29 = vsyncpa [#allocation4 + $0x1], 0  ;;  %s2021_s0 = smov 0   ;;  %s2023_s30 = smov 0  }
   0xf   :  { %s2025_s20 = smov 0   ;;  %s2027_s21 = smov 0  }
  0x10 LB: > { %2298 = sst [smem:[#allocation16_spill]] %s1893_s0  ;;  %s2042_s1 = sadd.s32 4294967295, %s1905_s21   ;;  %s1905_s21 = sphi %s2027_s21, %s2322_s21   ;;  %s1901_s20 = sphi %s2025_s20, %s2324_s20   ;;  %s1897_s30 = sphi %s2023_s30, %s2326_s30   ;;  %s1893_s0 = sphi %s2021_s0, %s2325_s0  }
  0x11   : > { %2299 = sst [smem:[#allocation17_spill]] %s1901_s20  ;;  %s1444_s22 = sadd.s32 4294967294, %s1905_s21  }
  0x12   : > { %2300 = sst [smem:[#allocation18_spill]] %s1905_s21  ;;  %s2046_s2 = sadd.s32 1, %s1905_s21  }
  0x13   : > { %2301 = sst [smem:[#allocation19_spill]] %s2046_s2  ;;  %s456_s23 = sadd.s32 1, %s1901_s20 }
  0x14   : > { %s453_s24 = ssub.s32 %s1905_s21, %s2046_s2  ;;  %p466_p0 = scmp.ne.s32.totalorder %s1901_s20, %s1897_s30 }
  0x15   : > { %p454_p1 = scmp.eq.s32.totalorder %s453_s24, 0  ;;  %p467_p2 = scmp.eq.s32.totalorder %s2042_s1, 1 }
  0x16   : > { %p472_p3 = scmp.ne.s32.totalorder %s1897_s30, %s1893_s0  ;;  %p473_p4 = scmp.eq.s32.totalorder %s1444_s22, 1 }
  0x17   : > { %s2057_s25 = scalar_select %p454_p1, %s1901_s20, %s456_s23  }
  0x18   : > { %p2059_p5 = por %p467_p2, %p466_p0  ;;  %p2063_p6 = por %p473_p4, %p472_p3 }
  0x19   : > { %2302 = sst [smem:[#allocation20_spill]] %s2057_s25  ;;  %p1445_p7 = scmp.ge.s32.totalorder %s1905_s21, 1 }
  0x1a   : > { %s2303_s3 = scalar_select %p2059_p5, 1, 0 }
  0x1b   : > { %s2305_s26 = scalar_select %p2063_p6, 1, 0 }
  0x1c   : > { %2304 = sst [smem:[#allocation21_spill]] %s2303_s3  ;;  %p480_p8 = scmp.lt.s32.totalorder %s1905_s21, 3 }
  0x1d   : > { %2306 = sst [smem:[#allocation22_spill]] %s2305_s26  ;;  %p1592_p9 = scmp.eq.s32.totalorder %s2042_s1, 0 }
  0x1e   : > { %p2070_p10 = pnand %p1445_p7, %p480_p8  ;;  %s2308_s4 = sld [smem:[#allocation27_spill]] }
  0x1f   : > { %s2309_s9 = sld [smem:[#allocation28_spill]]  ;;  %s1907_s2 = smov [#allocation5]  }
  0x20   : > { %p1572_p11 = pneg %p2070_p10  ;;  %s507_s26 = sshll.u32 %s1907_s2, 4  ;;  %s508_s26 = int_to_ptr.vmem [resolvable:$true] %s507_s26 }
  0x21   : > { %s1908_s28 = smov 64   ;;  %s1909_s29 = smov 4  }
  0x22   : > { %p2084_p12 = pnand %p1592_p9, %p1572_p11  ;;  %s2311_s0 = sld [smem:[#allocation26_spill]] }
  0x23   : > { %s519_s3 = sshll.u32 %s2265_s5, 4  ;;  %s1911_s19 = smov [#allocation2]   ;;  %s520_s3 = int_to_ptr.hbm [resolvable:$true] %s519_s3 }
  0x24   : > { %s505_s22 = sshll.u32 %s2308_s4, 4  ;;  %s1910_s4 = smov [#allocation8]   ;;  %s506_s22 = int_to_ptr.hbm [resolvable:$true] %s505_s22 }
  0x25   : > { %s542_s25 = sshll.u32 %s2309_s9, 4  ;;  %s544_s23 = sshll.u32 %s1910_s4, 4  ;;  %s543_s25 = int_to_ptr.hbm [resolvable:$true] %s542_s25  ;;  %s545_s23 = int_to_ptr.vmem [resolvable:$true] %s544_s23 }
  0x26   : > { %1578 = dma.hbm_to_vmem [thread:$0]  (!%p2084_p12), %s506_s22, 256, %s508_s26, [#allocation6], %s1908_s28, %s1908_s28, %s1909_s29  }
  0x27   : > { %1584 = dma.hbm_to_vmem [thread:$0]  (!%p2084_p12), %s543_s25, 256, %s545_s23, [#allocation9], %s1908_s28, %s1908_s28, %s1909_s29  }
  0x28   : > { %s491_s21 = sshll.u32 %s2311_s0, 4  ;;  %s493_s17 = sshll.u32 %s1911_s19, 4  ;;  %s492_s21 = int_to_ptr.hbm [resolvable:$true] %s491_s21  ;;  %s494_s17 = int_to_ptr.vmem [resolvable:$true] %s493_s17 }
  0x29   : > { %1575 = dma.hbm_to_vmem [thread:$0]  (!%p2084_p12), %s492_s21, 256, %s494_s17, [#allocation3], %s1908_s28, %s1908_s28, %s1909_s29  }
  0x2a   : > { %s1912_s4 = smov [#allocation7]   ;;  %s565_s0 = sshll.u32 %s2273_s13, 4  ;;  %s566_s0 = int_to_ptr.hbm [resolvable:$true] %s565_s0 }
  0x2b   : > { %s521_s26 = sshll.u32 %s1912_s4, 4  ;;  %s1913_s25 = smov [#allocation10]   ;;  %s522_s26 = int_to_ptr.vmem [resolvable:$true] %s521_s26 }
  0x2c   : > { %1581 = dma.hbm_to_vmem [thread:$0]  (!%p2084_p12), %s520_s3, 256, %s522_s26, [#allocation6], %s1908_s28, %s1908_s28, %s1909_s29  }
  0x2d   : > { %s567_s18 = sshll.u32 %s1913_s25, 4  ;;  %619 = sbr.rel (%p2070_p10) target bundleno = 1910 (0x776), region = 96  ;;  %s568_s18 = int_to_ptr.vmem [resolvable:$true] %s567_s18 }
  0x2e   : > { %1587 = dma.hbm_to_vmem [thread:$0]  (!%p2084_p12), %s566_s0, 256, %s568_s18, [#allocation9], %s1908_s28, %s1908_s28, %s1909_s29  }
  0x32   : > { %1876 = dma.done.wait (%p1592_p9), [#allocation3], 256  }
  0x33   : > { %1878 = vsyncadd (%p1592_p9), [#allocation3], 4294967040 }
  0x34   : > { %1880 = dma.done.wait (%p1592_p9), [#allocation6], 512  }
  0x35   : > { %1882 = vsyncadd (%p1592_p9), [#allocation6], 4294966784 }
  0x36   : > { %1884 = dma.done.wait (%p1592_p9), [#allocation9], 512  }
  0x37   : > { %1886 = vsyncadd (%p1592_p9), [#allocation9], 4294966784  ;;  %p703_p13 = scmp.lt.s32.totalorder %s2042_s1, 1  ;;  %s2312_s3 = sld [smem:[#allocation24_spill]]  ;;  %v1539_v0 = vld [vmem:[#allocation5 + $0x8] sm:$0xff]  ;;  %v1537_v1 = vld [vmem:[#allocation2 + $0x8] sm:$0xff] }
  0x38   : > { %s2313_s23 = sld [smem:[#allocation23_spill]]  ;;  %v1538_v2 = vld [vmem:[#allocation5] sm:$0xff]  ;;  %v1536_v3 = vld [vmem:[#allocation2] sm:$0xff]  ;;  %786 = vmatpush.bf16.msra.mxu1 %v1539_v0  ;;  %748 = vmatpush.bf16.msra.mxu0 %v1537_v1  ;;  %vm738_vm0 = vcmask 261120   ;;  %vm873_vm1 = vcmask 64512   ;;  %s1914_s9 = smov 120  }
  0x39   : > { %s704_s17 = scalar_select %p703_p13, %s2042_s1, 1  ;;  %v1649_v8 = vld [vmem:[%s2267_s7] ss:$0 sm:$0xff]  ;;  %v1541_v19 = vld [vmem:[#allocation7 + $0x8] sm:$0xff]  ;;  %vm1001_vm2 = vcmask 1043456   ;;  %vm1088_vm3 = vcmask 130048  }
  0x3a   : > { %v1650_v9 = vld [vmem:[%s2266_s6] ss:$0 sm:$0xff]  ;;  %s1915_s0 = smov 104   ;;  %s1916_s25 = smov 112   ;;  %824 = vmatpush.bf16.msra.mxu2 %v1541_v19  ;;  %vm1090_vm4 = vcmask 195584   ;;  %vm1244_vm9 = vcmask 523264  }
  0x3b   : > { %s2123_s19 = sshll.u32 %s704_s17, 3  ;;  %v1540_v20 = vld [vmem:[#allocation7] sm:$0xff]  ;;  %s2314_s20 = sld [smem:[#allocation25_spill]] }
  0x3c   : > { %787 = vmatpush.bf16.msra.mxu1 %v1538_v2  ;;  %749 = vmatpush.bf16.msra.mxu0 %v1536_v3  ;;  %v1651_v40 = vld [vmem:[%s2268_s8] ss:$0 sm:$0xff]  ;;  %s1918_s28 = smov 8   ;;  %s1919_s29 = smov 24  }
  0x3d   : > { %s710_s27 = scalar_lea.vmem %s2312_s3, %s2123_s19  ;;  %s1533_s2 = sshll.u32 %s2042_s1, 3 }
  0x3e   : > { %s706_s24 = scalar_lea.vmem %s2313_s23, %s2123_s19  ;;  %v755_v4 = vld [vmem:[%s710_s27] sm:$0xff]  ;;  %825 = vmatpush.bf16.msra.mxu2 %v1540_v20  ;;  %s1917_s27 = smov 16  }
  0x3f   : > { %v2133_v5 = vld [vmem:[%s706_s24] sm:$0xff]  ;;  %v756_v6 = vpack.c.bf16 %v755_v4, %v755_v4  ;;  %s700_s23 = sand.u32 1, %s1897_s30   ;;  %s2315_s22 = sld [smem:[#allocation29_spill]] }
  0x40   : > { %v717_v7 = vpack.c.bf16 %v2133_v5, %v2133_v5  ;;  %s1458_s24 = sshll.u32 %s700_s23, 3 }
  0x41   : > { %1479 = vmatmul.msk.bf16.vlgmr.msra.gmra.mxu1 %vm738_vm0, %v756_v6  ;;  %s714_s21 = scalar_lea.vmem %s2314_s20, %s2123_s19  ;;  %s2318_s19 = sld [smem:[#allocation30_spill]] }
  0x42   : > { %1470 = vmatmul.msk.bf16.vlgmr.msra.gmra.mxu0 %vm738_vm0, %v717_v7  ;;  %v793_v21 = vld [vmem:[%s714_s21] sm:$0xff]  ;;  %s702_s3 = scalar_lea.vmem [#allocation11], %s1458_s24 }
  0x43   : > { %v794_v22 = vpack.c.bf16 %v793_v21, %v793_v21  ;;  %s1308_s1 = sshll.u32 %s702_s3, 4  ;;  %s1309_s1 = int_to_ptr.vmem [resolvable:$true] %s1308_s1 }
  0x45   : > { %1488 = vmatmul.msk.bf16.vlgmr.msra.gmra.mxu2 %vm738_vm0, %v794_v22 }
  0xbe   : > { %v789_v10 = vpop.f32.mrf.mxu1 }
  0xbf   : > { %v751_v11 = vpop.f32.mrf.mxu0  ;;  %v790_v12 = vadd.f32 %v1649_v8, %v789_v10 }
  0xc0   : > { %v752_v13 = vadd.f32 %v1650_v9, %v751_v11 }
  0xc1   : > { %846 = vrot.lane.b32.xlu1 %v790_v12, %s1914_s9  ;;  %852 = vrot.lane.b32.xlu0 %v790_v12, %s1915_s0  ;;  %v855_v14 = vpack.c.bf16 %v790_v12, %v790_v12 }
  0xc2   : > { %832 = vrot.lane.b32.xlu2 %v752_v13, %s1914_s9  ;;  %v841_v18 = vpack.c.bf16 %v752_v13, %v752_v13 }
  0xc3   : > { %v878_v15 = vsel %vm873_vm1, %v855_v14, 0 }
  0xc4   : > { %887 = vmatpush.bf16.xpose.msra.mxu3 %v878_v15 }
  0xc6   : > { %v791_v16 = vpop.f32.mrf.mxu1 }
  0xc7   : > { %v753_v17 = vpop.f32.mrf.mxu0 }
  0xc8   : > { %v827_v41 = vpop.f32.mrf.mxu2 }
  0xc9   : > { %849 = vrot.lane.b32.xlu1 %v790_v12, %s1916_s25  ;;  %838 = vrot.lane.b32.xlu0 %v752_v13, %s1915_s0  ;;  %v828_v42 = vadd.f32 %v1651_v40, %v827_v41 }
  0xca   : > { %835 = vrot.lane.b32.xlu2 %v752_v13, %s1916_s25 }
  0xcb   : > { %1489 = vmatmul.msk.bf16.vlgmr.msra.gmra.mxu3 %vm873_vm1, %v841_v18  ;;  %v869_v43 = vpack.c.bf16 %v828_v42, %v828_v42 }
  0xcd   : > { %v1003_v44 = vsel %vm1001_vm2, %v869_v43, 0 }
  0xce   : > { %1012 = vmatpush.bf16.msrb.mxu3 %v1003_v44 }
  0xd0   : > { %v829_v45 = vpop.f32.mrf.mxu2 }
 0x11c   : > { %v833_v29 = vpop.permute.xlu2 %832 }
 0x11d   : > { %v842_v32 = vpack.c.bf16 %v833_v29, %v833_v29 }
 0x124   : > { %v836_v36 = vpop.permute.xlu2 %835 }
 0x125   : > { %v843_v37 = vpack.c.bf16 %v836_v36, %v836_v36 }
 0x133   : > { %v847_v23 = vpop.permute.xlu1 %846  ;;  %v853_v24 = vpop.permute.xlu0 %852 }
 0x134   : > { %v856_v25 = vpack.c.bf16 %v847_v23, %v847_v23  ;;  %v858_v26 = vpack.c.bf16 %v853_v24, %v853_v24 }
 0x136   : > { %v897_v27 = vsel %vm873_vm1, %v856_v25, 0  ;;  %v935_v28 = vsel %vm873_vm1, %v858_v26, 0 }
 0x137   : > { %906 = vmatpush.bf16.xpose.msrb.mxu0 %v897_v27  ;;  %944 = vmatpush.bf16.xpose.msrb.mxu2 %v935_v28 }
 0x13b   : > { %v850_v30 = vpop.permute.xlu1 %849  ;;  %v839_v31 = vpop.permute.xlu0 %838 }
 0x13c   : > { %v857_v33 = vpack.c.bf16 %v850_v30, %v850_v30  ;;  %v844_v34 = vpack.c.bf16 %v839_v31, %v839_v31 }
 0x13e   : > { %1490 = vmatmul.msk.bf16.vlgmr.msrb.gmra.mxu0 %vm873_vm1, %v842_v32  ;;  %1492 = vmatmul.msk.bf16.vlgmr.msrb.gmra.mxu2 %vm873_vm1, %v844_v34  ;;  %v916_v35 = vsel %vm873_vm1, %v857_v33, 0 }
 0x13f   : > { %925 = vmatpush.bf16.xpose.msrb.mxu1 %v916_v35 }
 0x146   : > { %1491 = vmatmul.msk.bf16.vlgmr.msrb.gmra.mxu1 %vm873_vm1, %v843_v37 }
 0x14e   : > { %v889_v38 = vpop.f32.mrf.mxu3 }
 0x14f   : > { %v950_v55 = vsel %vm873_vm1, %v889_v38, -inf }
 0x156   : > { %v891_v39 = vpop.f32.mrf.mxu3 }
 0x1bb   : > { %v908_v46 = vpop.f32.mrf.mxu0 }
 0x1bc   : > { %v953_v47 = vsel %vm873_vm1, %v908_v46, -inf }
 0x1bd   : > { %954 = vmax.xlane.f32.xlu1 %v953_v47  ;;  %v1542_v47 = vld [vmem:[#allocation8] sm:$0xff] }
 0x1c1   : > { %v946_v48 = vpop.f32.mrf.mxu2 }
 0x1c2   : > { %v959_v49 = vsel %vm873_vm1, %v946_v48, -inf }
 0x1c3   : > { %v910_v50 = vpop.f32.mrf.mxu0  ;;  %v927_v51 = vpop.f32.mrf.mxu1  ;;  %960 = vmax.xlane.f32.xlu0 %v959_v49 }
 0x1c4   : > { %v956_v52 = vsel %vm873_vm1, %v927_v51, -inf }
 0x1c5   : > { %957 = vmax.xlane.f32.xlu2 %v956_v52 }
 0x1c9   : > { %v948_v53 = vpop.f32.mrf.mxu2 }
 0x1cb   : > { %v929_v54 = vpop.f32.mrf.mxu1 }
 0x1cd   : > { %951 = vmax.xlane.f32.xlu2 %v950_v55  ;;  %v1652_v55 = vld [vmem:[%s2270_s10] ss:$0 sm:$0xff] }
 0x230   : > { %v955_v56 = vpop.xlane.xlu1 %954 }
 0x231   : > { %v963_v57 = vsub.f32 %v908_v46, %v955_v56  ;;  %v1543_v46 = vld [vmem:[#allocation8 + $0x8] sm:$0xff] }
 0x232   : > { %1122 = vmatpush.bf16.msra.mxu3 %v1543_v46 }
 0x233   : > { %v968_v58 = vmul.f32 1.442695, %v963_v57 }
 0x235   : > { %1659 = vpow2.f32 %v968_v58 }
 0x236   : > { %v961_v59 = vpop.xlane.xlu0 %960  ;;  %1123 = vmatpush.bf16.msra.mxu3 %v1542_v47 }
 0x237   : > { %v965_v60 = vsub.f32 %v946_v48, %v961_v59 }
 0x238   : > { %v958_v61 = vpop.xlane.xlu2 %957 }
 0x239   : > { %v972_v62 = vmul.f32 1.442695, %v965_v60  ;;  %v964_v63 = vsub.f32 %v927_v51, %v958_v61  ;;  %v1920_v61 = vmov 32.0  }
 0x23b   : > { %v1660_v0 = vpop.eup %1659  ;;  %1661 = vpow2.f32 %v972_v62  ;;  %v970_v1 = vmul.f32 1.442695, %v964_v63 }
 0x23c   : > { %v977_v2 = vsel %vm873_vm1, %v1660_v0, 0.0 }
 0x23d   : > { %1663 = vpow2.f32 %v970_v1  ;;  %978 = vadd.xlane.f32.xlu1 %v977_v2 }
 0x240   : > { %v952_v8 = vpop.xlane.xlu2 %951 }
 0x241   : > { %v1662_v3 = vpop.eup %1661  ;;  %v962_v9 = vsub.f32 %v889_v38, %v952_v8 }
 0x242   : > { %v983_v4 = vsel %vm873_vm1, %v1662_v3, 0.0 }
 0x243   : > { %v1664_v6 = vpop.eup %1663  ;;  %984 = vadd.xlane.f32.xlu0 %v983_v4  ;;  %v966_v10 = vmul.f32 1.442695, %v962_v9 }
 0x244   : > { %v980_v7 = vsel %vm873_vm1, %v1664_v6, 0.0 }
 0x245   : > { %981 = vadd.xlane.f32.xlu2 %v980_v7  ;;  %1665 = vpow2.f32 %v966_v10  ;;  %v1544_v10 = vld [vmem:[#allocation10] sm:$0xff] }
 0x24b   : > { %v1666_v11 = vpop.eup %1665 }
 0x24c   : > { %v974_v12 = vsel %vm873_vm1, %v1666_v11, 0.0 }
 0x256   : > { %860 = vrot.lane.b32.xlu1 %v828_v42, %s1914_s9 }
 0x257   : > { %866 = vrot.lane.b32.xlu0 %v828_v42, %s1915_s0 }
 0x25d   : > { %863 = vrot.lane.b32.xlu2 %v828_v42, %s1916_s25  ;;  %s2316_s25 = sld [smem:[#allocation31_spill]] }
 0x263   : > { %s1306_s18 = scalar_lea.hbm %s2316_s25, %s1533_s2  ;;  %s1851_s24 = scalar_lea.hbm %s2316_s25, 16 }
 0x281   : > { %975 = vadd.xlane.f32.xlu0 %v974_v12 }
 0x2b0   : > { %v979_v14 = vpop.xlane.xlu1 %978 }
 0x2b6   : > { %v985_v15 = vpop.xlane.xlu0 %984 }
 0x2b8   : > { %v982_v13 = vpop.xlane.xlu2 %981 }
 0x2b9   : > { %1667 = vrcp.f32 %v982_v13 }
 0x2ba   : > { %1669 = vrcp.f32 %v979_v14  ;;  %v1548_v14 = vld [vmem:[%s2275_s15 + $0x10] sm:$0xff] }
 0x2bb   : > { %1671 = vrcp.f32 %v985_v15 }
 0x2bf   : > { %v1668_v16 = vpop.eup %1667 }
 0x2c0   : > { %v864_v17 = vpop.permute.xlu2 %863  ;;  %v992_v18 = vmul.f32 %v1668_v16, %v1664_v6  ;;  %v1670_v22 = vpop.eup %1669 }
 0x2c1   : > { %v871_v19 = vpack.c.bf16 %v864_v17, %v864_v17  ;;  %v1672_v23 = vpop.eup %1671  ;;  %v991_v25 = vmul.f32 %v1670_v22, %v1660_v0  ;;  %v1653_v22 = vld [vmem:[%s2271_s11] ss:$0 sm:$0xff] }
 0x2c2   : > { %v996_v21 = vpack.c.bf16 %v992_v18, %v992_v18  ;;  %v993_v28 = vmul.f32 %v1672_v23, %v1662_v3 }
 0x2c3   : > { %v1041_v20 = vsel %vm1001_vm2, %v871_v19, 0  ;;  %v995_v32 = vpack.c.bf16 %v991_v25, %v991_v25 }
 0x2c4   : > { %1050 = vmatpush.bf16.msra.mxu1 %v1041_v20  ;;  %v997_v33 = vpack.c.bf16 %v993_v28, %v993_v28 }
 0x2c7   : > { %1495 = vmatmul.msk.bf16.vlgmr.msra.gmra.mxu1 %vm873_vm1, %v996_v21 }
 0x2c8   : > { %v861_v24 = vpop.permute.xlu1 %860 }
 0x2c9   : > { %v870_v26 = vpack.c.bf16 %v861_v24, %v861_v24  ;;  %v867_v27 = vpop.permute.xlu0 %866  ;;  %v1654_v24 = vld [vmem:[%s2272_s12] ss:$0 sm:$0xff] }
 0x2ca   : > { %v872_v29 = vpack.c.bf16 %v867_v27, %v867_v27 }
 0x2cb   : > { %v1022_v30 = vsel %vm1001_vm2, %v870_v26, 0 }
 0x2cc   : > { %v1060_v31 = vsel %vm1001_vm2, %v872_v29, 0  ;;  %1031 = vmatpush.bf16.msra.mxu0 %v1022_v30  ;;  %v1547_v29 = vld [vmem:[%s2275_s15 + $0x8] sm:$0xff]  ;;  %v1546_v30 = vld [vmem:[%s2275_s15] sm:$0xff] }
 0x2cd   : > { %1069 = vmatpush.bf16.msra.mxu2 %v1060_v31  ;;  %v1655_v31 = vld [vmem:[%s2274_s14] ss:$0 sm:$0xff] }
 0x2cf   : > { %1494 = vmatmul.msk.bf16.vlgmr.msra.gmra.mxu0 %vm873_vm1, %v995_v32 }
 0x2d0   : > { %1496 = vmatmul.msk.bf16.vlgmr.msra.gmra.mxu2 %vm873_vm1, %v997_v33 }
 0x2f4   : > { %v976_v34 = vpop.xlane.xlu0 %975 }
 0x2f5   : > { %1673 = vrcp.f32 %v976_v34 }
 0x2f6   : > { %1675 = vrcp.f32 %v1920_v61 }
 0x2fb   : > { %v1674_v35 = vpop.eup %1673 }
 0x2fc   : > { %v990_v36 = vmul.f32 %v1674_v35, %v1666_v11  ;;  %v1676_v62 = vpop.eup %1675  ;;  %v1549_v11 = vld [vmem:[%s2275_s15 + $0x18] sm:$0xff] }
 0x2fd   : > { %v1136_v63 = vmul.f32 32.0, %v1676_v62  ;;  %vm1140_vm5 = vweird.f32 %v1676_v62  ;;  %1252 = vmatpush.bf16.msrb.mxu1 %v1549_v11 }
 0x2fe   : > { %v994_v37 = vpack.c.bf16 %v990_v36, %v990_v36 }
 0x2ff   : > { %v1137_v0 = vsub.f32 1.0, %v1136_v63 }
 0x300   : > { %1493 = vmatmul.msk.bf16.vlgmr.msrb.gmra.mxu3 %vm873_vm1, %v994_v37  ;;  %v1656_v37 = vld [vmem:[%s2276_s16] ss:$0 sm:$0xff] }
 0x301   : > { %v1138_v1 = vmul.f32 %v1676_v62, %v1137_v0  ;;  %1253 = vmatpush.bf16.msrb.mxu1 %v1548_v14 }
 0x303   : > { %v1139_v2 = vadd.f32 %v1676_v62, %v1138_v1 }
 0x305   : > { %v1141_v3 = vsel %vm1140_vm5, %v1676_v62, %v1139_v2  ;;  %1254 = vmatpush.bf16.msrb.mxu1 %v1547_v29 }
 0x309   : > { %1255 = vmatpush.bf16.msrb.mxu1 %v1546_v30 }
 0x344   : > { %v1052_v38 = vpop.f32.mrf.mxu1 }
 0x345   : > { %1080 = vrot.lane.b32.xlu2 %v1052_v38, %s1917_s27  ;;  %s1310_s27 = sshll.u32 %s1306_s18, 4  ;;  %s1311_s27 = int_to_ptr.hbm [resolvable:$true] %s1310_s27 }
 0x34c   : > { %v1033_v39 = vpop.f32.mrf.mxu0  ;;  %v1054_v40 = vpop.f32.mrf.mxu1 }
 0x34d   : > { %1076 = vrot.lane.b32.xlu1 %v1033_v39, %s1918_s28  ;;  %s1296_s28 = scalar_lea.sflag [#allocation4], %s700_s23 }
 0x353   : > { %v1071_v41 = vpop.f32.mrf.mxu2 }
 0x354   : > { %v1035_v42 = vpop.f32.mrf.mxu0 }
 0x355   : > { %1084 = vrot.lane.b32.xlu1 %v1071_v41, %s1919_s29  ;;  %s1845_s29 = sshra.s32 %s1311_s27, 4  ;;  %s1846_s29 = int_to_ptr.hbm [resolvable:$true] %s1845_s29 }
 0x356   : > { %s1847_s2 = scalar_lea.hbm %s1846_s29, 8  ;;  %p1852_p3 = scmp.lt.s32.totalorder %s1846_s29, %s2316_s25 }
 0x357   : > { %p1848_p0 = scmp.ne.s32.totalorder %s1846_s29, %s1847_s2  ;;  %p1853_p4 = scmp.lt.s32.totalorder %s1851_s24, %s1847_s2 }
 0x359   : > { %p1849_p1 = pnand %p1848_p0, %p2059_p5  ;;  %p1854_p7 = por %p1853_p4, %p1852_p3 }
 0x35b   : > { %v1073_v43 = vpop.f32.mrf.mxu2  ;;  %p1850_p2 = pneg %p1849_p1 }
 0x35d   : > { %p1855_p8 = pnand %p1854_p7, %p1850_p2 }
 0x383   : > { %v1014_v44 = vpop.f32.mrf.mxu3 }
 0x38b   : > { %v1016_v45 = vpop.f32.mrf.mxu3 }
 0x39f   : > { %v1081_v50 = vpop.permute.xlu2 %1080 }
 0x3bf   : > { %v1077_v48 = vpop.permute.xlu1 %1076 }
 0x3c0   : > { %v1087_v49 = vsel %vm873_vm1, %v1014_v44, %v1077_v48 }
 0x3c1   : > { %v1089_v52 = vsel %vm1088_vm3, %v1087_v49, %v1081_v50 }
 0x3c7   : > { %v1085_v51 = vpop.permute.xlu1 %1084 }
 0x3c8   : > { %v1091_v53 = vsel %vm1090_vm4, %v1089_v52, %v1085_v51 }
 0x3c9   : > { %v1092_v54 = vpack.c.bf16 %v1091_v53, %v1091_v53 }
 0x3cb   : > { %1505 = vmatmul.msk.bf16.vlgmr.msra.gmra.mxu3 %vm738_vm0, %v1092_v54 }
 0x44e   : > { %v1125_v56 = vpop.f32.mrf.mxu3 }
 0x44f   : > { %v1126_v57 = vadd.f32 %v1652_v55, %v1125_v56 }
 0x451   : > { %v1129_v58 = vadd.f32 %v1126_v57, %v2133_v5  ;;  %v1545_v5 = vld [vmem:[#allocation10 + $0x8] sm:$0xff]  ;;  %v1657_v57 = vld [vmem:[%s2315_s22] ss:$0 sm:$0xff] }
 0x452   : > { %1199 = vmatpush.bf16.msrb.mxu0 %v1545_v5 }
 0x453   : > { %v1132_v59 = vsel %vm738_vm0, %v1129_v58, 0.0 }
 0x454   : > { %1133 = vadd.xlane.f32.xlu2 %v1132_v59 }
 0x456   : > { %v1127_v60 = vpop.f32.mrf.mxu3  ;;  %1200 = vmatpush.bf16.msrb.mxu0 %v1544_v10 }
 0x457   : > { %v1658_v60 = vld [vmem:[%s2318_s19] ss:$0 sm:$0xff] }
 0x4c7   : > { %v1134_v4 = vpop.xlane.xlu2 %1133 }
 0x4c8   : > { %v1142_v6 = vmul.f32 %v1141_v3, %v1134_v4 }
 0x4ca   : > { %v1143_v7 = vsub.f32 %v1129_v58, %v1142_v6 }
 0x4cc   : > { %v1144_v8 = vmul.f32 %v1143_v7, %v1143_v7 }
 0x4ce   : > { %v1145_v9 = vsel %vm738_vm0, %v1144_v8, 0.0 }
 0x4cf   : > { %1146 = vadd.xlane.f32.xlu1 %v1145_v9 }
 0x542   : > { %v1147_v12 = vpop.xlane.xlu1 %1146 }
 0x543   : > { %v1148_v13 = vmul.f32 %v1147_v12, %v1141_v3 }
 0x545   : > { %v1149_v15 = vadd.f32 1e-05, %v1148_v13 }
 0x547   : > { %1677 = vrsqrt.f32 %v1149_v15  ;;  %vm1156_vm7 = vweird.f32 %v1149_v15 }
 0x54d   : > { %v1678_v16 = vpop.eup %1677 }
 0x54e   : > { %v1151_v17 = vmul.f32 %v1678_v16, %v1149_v15  ;;  %vm1157_vm6 = vweird.f32 %v1678_v16 }
 0x54f   : > { %vm1158_vm8 = vmor %vm1156_vm7, %vm1157_vm6 }
 0x550   : > { %v1152_v18 = vmul.f32 %v1678_v16, %v1151_v17 }
 0x552   : > { %v1153_v19 = vmul.f32 0.5, %v1152_v18 }
 0x554   : > { %v1154_v20 = vsub.f32 1.5, %v1153_v19 }
 0x556   : > { %v1155_v21 = vmul.f32 %v1678_v16, %v1154_v20 }
 0x558   : > { %v1159_v23 = vsel %vm1158_vm8, %v1678_v16, %v1155_v21 }
 0x559   : > { %v1160_v25 = vmul.f32 %v1159_v23, %v1143_v7 }
 0x55b   : > { %v1164_v26 = vmul.f32 %v1653_v22, %v1160_v25 }
 0x55d   : > { %v1168_v27 = vadd.f32 %v1654_v24, %v1164_v26 }
 0x55f   : > { %v1169_v28 = vpack.c.bf16 %v1168_v27, %v1168_v27 }
 0x561   : > { %1514 = vmatmul.msk.bf16.vlgmr.msrb.gmra.mxu0 %vm738_vm0, %v1169_v28 }
 0x5de   : > { %v1202_v32 = vpop.f32.mrf.mxu0 }
 0x5df   : > { %v1203_v33 = vadd.f32 %v1655_v31, %v1202_v32 }
 0x5e1   : > { %v1206_v34 = vmax.f32 %v1203_v33, 0.0 }
 0x5e3   : > { %v1207_v35 = vpack.c.bf16 %v1206_v34, %v1206_v34 }
 0x5e5   : > { %1531 = vmatmul.msk.bf16.vlgmr.msrb.gmra.mxu1 %vm1244_vm9, %v1207_v35 }
 0x5e6   : > { %v1204_v36 = vpop.f32.mrf.mxu0 }
 0x662   : > { %v1257_v38 = vpop.f32.mrf.mxu1 }
 0x663   : > { %v1258_v39 = vadd.f32 %v1656_v37, %v1257_v38 }
 0x665   : > { %v1261_v40 = vadd.f32 %v1258_v39, %v1168_v27 }
 0x667   : > { %v1264_v41 = vsel %vm738_vm0, %v1261_v40, 0.0 }
 0x668   : > { %1265 = vadd.xlane.f32.xlu0 %v1264_v41 }
 0x66a   : > { %v1259_v42 = vpop.f32.mrf.mxu1 }
 0x6db   : > { %v1266_v43 = vpop.xlane.xlu0 %1265 }
 0x6dc   : > { %v1267_v44 = vmul.f32 %v1266_v43, %v1141_v3 }
 0x6de   : > { %v1268_v45 = vsub.f32 %v1261_v40, %v1267_v44 }
 0x6e0   : > { %v1269_v46 = vmul.f32 %v1268_v45, %v1268_v45 }
 0x6e2   : > { %v1270_v47 = vsel %vm738_vm0, %v1269_v46, 0.0 }
 0x6e3   : > { %1271 = vadd.xlane.f32.xlu0 %v1270_v47 }
 0x756   : > { %v1272_v48 = vpop.xlane.xlu0 %1271 }
 0x757   : > { %v1273_v49 = vmul.f32 %v1272_v48, %v1141_v3 }
 0x759   : > { %v1274_v50 = vadd.f32 1e-05, %v1273_v49 }
 0x75b   : > { %1679 = vrsqrt.f32 %v1274_v50  ;;  %vm1281_vm11 = vweird.f32 %v1274_v50 }
 0x761   : > { %v1680_v51 = vpop.eup %1679 }
 0x762   : > { %v1276_v52 = vmul.f32 %v1680_v51, %v1274_v50  ;;  %vm1282_vm10 = vweird.f32 %v1680_v51 }
 0x763   : > { %vm1283_vm12 = vmor %vm1281_vm11, %vm1282_vm10 }
 0x764   : > { %v1277_v53 = vmul.f32 %v1680_v51, %v1276_v52 }
 0x766   : > { %v1278_v54 = vmul.f32 0.5, %v1277_v53 }
 0x768   : > { %v1279_v55 = vsub.f32 1.5, %v1278_v54 }
 0x76a   : > { %v1280_v56 = vmul.f32 %v1680_v51, %v1279_v55 }
 0x76c   : > { %v1284_v58 = vsel %vm1283_vm12, %v1680_v51, %v1280_v56 }
 0x76d   : > { %v1285_v59 = vmul.f32 %v1284_v58, %v1268_v45 }
 0x76f   : > { %v1289_v61 = vmul.f32 %v1657_v57, %v1285_v59 }
 0x771   : > { %v1293_v62 = vadd.f32 %v1658_v60, %v1289_v61 }
 0x773   : > { %1294 = vst.msk [vmem:[%s702_s3] sm:$0xff] %vm738_vm0, %v1293_v62 }
 0x774   : > { %1858 = shalt.err (!%p1855_p8)
}
 0x775   : > { %1570 = dma.vmem_to_hbm [thread:$0]  (%p2059_p5), %s1309_s1, 128, %s1311_s27, %s1296_s28  }
 0x776 PF: > { %s2319_s23 = sld [smem:[#allocation18_spill]] }
 0x777   : > { %s2320_s0 = sld [smem:[#allocation16_spill]] }
 0x77c   : > { %p1602_p9 = scmp.ge.s32.totalorder %s2319_s23, 2 }
 0x77d   : > { %s1322_s20 = sand.u32 1, %s2320_s0  }
 0x77e   : > { %p1589_p10 = pnand %p1602_p9, %p2063_p6  ;;  %s1323_s21 = scalar_lea.sflag [#allocation4], %s1322_s20 }
 0x780   : > { %p1590_p11 = pneg %p1589_p10 }
 0x782   : > { %1888 = dma.done.wait (%p1590_p11), %s1323_s21, 128  }
 0x783   : > { %1890 = vsyncadd (%p1590_p11), %s1323_s21, 4294967168  ;;  %s2322_s21 = sld [smem:[#allocation19_spill]]  ;;  %s2325_s0 = smov %s1897_s30 }
 0x784   : > { %s2323_s19 = sld [smem:[#allocation17_spill]] }
 0x785   : > { %s2324_s20 = sld [smem:[#allocation20_spill]] }
 0x789   : > { %p32_p12 = scmp.ge.s32.totalorder %s2322_s21, 4  }
 0x78a   : > { %s2326_s30 = smov %s2323_s19 }
 0x78b   :  { %34 = sbr.rel (!%p32_p12) target bundleno = 16 (0x10), region = 158 }
 0x790   :  { %1329 = vsyncpa [#allocation3], 1 }
 0x791   :  { %1331 = vsyncpa [#allocation3 + $0x1], 1 }
 0x792   :  { %1332 = vsyncpa [#allocation6], 1 }
 0x793   :  { %1333 = vsyncpa [#allocation9], 1 }
 0x794   :  { %1334 = vsyncpa [#allocation4], 1 }
 0x795   :  { %1336 = vsyncpa [#allocation4 + $0x1], 1 }

</bundles_post_ra>
